<compile_context>
chip_gen: v7x
topology: tpu7x:2x2x1
jax: 0.10.0
libtpu: 0.0.40
codegen_flags: <defaults>
</compile_context>

<pallas_src>
import jax
import jax.numpy as jnp
from jax.experimental import pallas as pl
from jax.experimental.pallas import tpu as pltpu

_LANE = 128


def _droppath_kernel(keep_ref, scale_ref, x_ref, o_ref):
    # keep_ref:  SMEM (N,) int32   1 = keep sample, 0 = drop sample
    # scale_ref: SMEM (N,) float32 bernoulli(keep_prob) / keep_prob
    # x_ref/o_ref: VMEM block (1, tile_rows, 128) — lane/sublane dense.
    b = pl.program_id(0)

    @pl.when(keep_ref[b] == 0)
    def _():
        # Dropped sample: write zeros, never touch x_ref (its DMA was elided
        # for all but the first tile of this sample).
        o_ref[...] = jnp.zeros_like(o_ref)

    @pl.when(keep_ref[b] != 0)
    def _():
        o_ref[...] = x_ref[...] * scale_ref[b].astype(o_ref.dtype)


def _chip_config():
    """Return (tile_bytes, vmem_limit_bytes) chosen per TPU generation."""
    try:
        kind = jax.devices()[0].device_kind.lower()
    except Exception:
        kind = ""
    if "v7" in kind:
        # 64 MiB physical / 32 MiB scoped default: 6 MiB tiles (24 MiB
        # double-buffered in+out) with an explicit 48 MiB scoped limit.
        return 6 * 1024 * 1024, 48 * 1024 * 1024
    if "v6" in kind:
        # 32 MiB scoped default: 4 MiB tiles -> 16 MiB double-buffered.
        return 4 * 1024 * 1024, None
    # v5e (16 MiB scoped default) and unknown: 2 MiB tiles -> 8 MiB.
    return 2 * 1024 * 1024, None


def _droppath_call(x3, keep, scale):
    """x3: (N, rows, 128); keep: (N,) int32; scale: (N,) float32."""
    n, rows, _ = x3.shape
    itemsize = jnp.dtype(x3.dtype).itemsize
    # Sublane packing multiple: 8 for 4-byte, 16 for 2-byte, 32 for 1-byte.
    sublane = max(8, 32 // itemsize)

    tile_bytes, vmem_limit = _chip_config()
    target_rows = max(sublane, tile_bytes // (_LANE * itemsize))
    target_rows -= target_rows % sublane
    rows_rounded = ((rows + sublane - 1) // sublane) * sublane
    tile_rows = min(target_rows, rows_rounded)
    num_tiles = pl.cdiv(rows, tile_rows)  # last tile may be partial (masked)

    def x_index_map(b, t, keep_ref, scale_ref):
        # Pin the row-tile index to 0 for dropped samples: Pallas elides the
        # HBM->VMEM copy when the block index is unchanged between steps, so a
        # dropped sample pays for at most one input tile.
        return (b, t * keep_ref[b], 0)

    def o_index_map(b, t, keep_ref, scale_ref):
        return (b, t, 0)

    grid_spec = pltpu.PrefetchScalarGridSpec(
        num_scalar_prefetch=2,
        grid=(n, num_tiles),
        in_specs=[pl.BlockSpec((1, tile_rows, _LANE), x_index_map)],
        out_specs=pl.BlockSpec((1, tile_rows, _LANE), o_index_map),
    )

    return pl.pallas_call(
        _droppath_kernel,
        grid_spec=grid_spec,
        out_shape=jax.ShapeDtypeStruct((n, rows, _LANE), x3.dtype),
        compiler_params=pltpu.CompilerParams(
            dimension_semantics=("parallel", "parallel"),
            vmem_limit_bytes=vmem_limit,
        ),
        cost_estimate=pl.CostEstimate(
            flops=n * rows * _LANE,
            transcendentals=0,
            bytes_accessed=2 * n * rows * _LANE * itemsize,
        ),
    )(keep, scale, x3)


def drop_path(x, *, p=0.0, training=False, key=None):
    """DropPath forward. x: (N, C, H, W). Matches PyTorch DropPath semantics."""
    if (not training) or p <= 0.0:
        return x
    if key is None:
        raise ValueError("drop_path: `key` must be provided when training with p > 0.")

    keep_prob = 1.0 - p
    n = x.shape[0]
    L = 1
    for d in x.shape[1:]:
        L *= d

    # Per-sample bernoulli mask (== torch.zeros((N,1,1,1)).bernoulli_(keep_prob))
    mask = jax.random.bernoulli(key, keep_prob, (n,))
    keep = mask.astype(jnp.int32)                               # (N,) -> SMEM
    scale = mask.astype(jnp.float32) / jnp.float32(keep_prob)   # (N,) -> SMEM

    if L % _LANE == 0:
        # Common conv case: free (bitcast) reshape, no pad, no post-slice.
        rows = L // _LANE
        out3 = _droppath_call(x.reshape(n, rows, _LANE), keep, scale)
        return out3.reshape(x.shape)

    # TODO(synk): rare fallback when C*H*W is not a multiple of 128 — the pad
    # and the trailing slice each cost an extra HBM pass over the activation.
    L_pad = ((L + _LANE - 1) // _LANE) * _LANE
    x_flat = jnp.pad(x.reshape(n, L), ((0, 0), (0, L_pad - L)))
    out3 = _droppath_call(x_flat.reshape(n, L_pad // _LANE, _LANE), keep, scale)
    return out3.reshape(n, L_pad)[:, :L].reshape(x.shape)


if __name__ == "__main__":
    key = jax.random.PRNGKey(0)
    k_x, k_mask = jax.random.split(key)

    N, C, H, W = 2, 4, 16, 16
    x = jax.random.normal(k_x, (N, C, H, W), dtype=jnp.float32)

    p = 0.5
    # Training path (kernel executes the masked scaling)
    y_train = jax.block_until_ready(drop_path(x, p=p, training=True, key=k_mask))

    # Reference check in plain JAX (same mask draw)
    keep_prob = 1.0 - p
    mask_ref = jax.random.bernoulli(k_mask, keep_prob, (N,)).astype(jnp.float32)
    y_ref = x / keep_prob * mask_ref[:, None, None, None]
    assert jnp.allclose(y_train, y_ref, atol=1e-6), "mismatch vs reference"

    # Eval path is identity
    y_eval = jax.block_until_ready(drop_path(x, p=p, training=False))
    assert jnp.allclose(y_eval, x), "eval path must be identity"

    print("KERNEL_OK")
</pallas_src>

<mosaic_0001>
module attributes {stable_mosaic.version = 11 : i64} {
  func.func @_droppath_kernel(%arg0: i32, %arg1: i32, %arg2: memref<2xi32, #tpu.memory_space<smem>>, %arg3: memref<2xf32, #tpu.memory_space<smem>>, %arg4: memref<1x8x128xf32, #tpu.memory_space<vmem>>, %arg5: memref<1x8x128xf32, #tpu.memory_space<vmem>>) attributes {dimension_semantics = [#tpu.dimension_semantics<parallel>, #tpu.dimension_semantics<parallel>], iteration_bounds = array<i64: 2, 1>, scalar_prefetch = 2 : i64, scratch_operands = 0 : i64, tpu.core_type = #tpu.core_type<tc>, window_params = [{transform_indices = @transform_0, window_bounds = array<i64: 1, 8, 128>}, {transform_indices = @transform_1, window_bounds = array<i64: 1, 8, 128>}]} {
    %0 = arith.index_cast %arg0 : i32 to index
    %1 = memref.load %arg2[%0] : memref<2xi32, #tpu.memory_space<smem>>
    %c0_i32 = arith.constant 0 : i32
    %2 = arith.cmpi eq, %1, %c0_i32 : i32
    %3 = arith.extui %2 : i1 to i32
    %c0_i32_0 = arith.constant 0 : i32
    %4 = arith.cmpi ne, %3, %c0_i32_0 : i32
    scf.if %4 {
      %cst = arith.constant 0.000000e+00 : f32
      %10 = vector.broadcast %cst : f32 to vector<1x8x128xf32>
      %c0 = arith.constant 0 : index
      %c0_3 = arith.constant 0 : index
      %c0_4 = arith.constant 0 : index
      %11 = vector.load %arg5[%c0, %c0_3, %c0_4] : memref<1x8x128xf32, #tpu.memory_space<vmem>>, vector<1x8x128xf32>
      tpu.vector_store %arg5[%c0, %c0_3, %c0_4], %10 {strides = array<i32>} : memref<1x8x128xf32, #tpu.memory_space<vmem>>, vector<1x8x128xf32>,
    } else {
    }
    %5 = arith.index_cast %arg0 : i32 to index
    %6 = memref.load %arg2[%5] : memref<2xi32, #tpu.memory_space<smem>>
    %c0_i32_1 = arith.constant 0 : i32
    %7 = arith.cmpi ne, %6, %c0_i32_1 : i32
    %8 = arith.extui %7 : i1 to i32
    %c0_i32_2 = arith.constant 0 : i32
    %9 = arith.cmpi ne, %8, %c0_i32_2 : i32
    scf.if %9 {
      %c0 = arith.constant 0 : index
      %c0_3 = arith.constant 0 : index
      %c0_4 = arith.constant 0 : index
      %10 = vector.load %arg4[%c0, %c0_3, %c0_4] : memref<1x8x128xf32, #tpu.memory_space<vmem>>, vector<1x8x128xf32>
      %11 = arith.index_cast %arg0 : i32 to index
      %12 = memref.load %arg3[%11] : memref<2xf32, #tpu.memory_space<smem>>
      %13 = vector.broadcast %12 : f32 to vector<1x8x128xf32>
      %14 = arith.mulf %10, %13 : vector<1x8x128xf32>
      %c0_5 = arith.constant 0 : index
      %c0_6 = arith.constant 0 : index
      %c0_7 = arith.constant 0 : index
      %15 = vector.load %arg5[%c0_5, %c0_6, %c0_7] : memref<1x8x128xf32, #tpu.memory_space<vmem>>, vector<1x8x128xf32>
      tpu.vector_store %arg5[%c0_5, %c0_6, %c0_7], %14 {strides = array<i32>} : memref<1x8x128xf32, #tpu.memory_space<vmem>>, vector<1x8x128xf32>,
    } else {
    }
    return
  }
  func.func @transform_0(%arg0: i32, %arg1: i32, %arg2: memref<2xi32, #tpu.memory_space<smem>>, %arg3: memref<2xf32, #tpu.memory_space<smem>>) -> (i32, i32, i32) {
    %0 = arith.index_cast %arg0 : i32 to index
    %1 = memref.load %arg2[%0] : memref<2xi32, #tpu.memory_space<smem>>
    %2 = arith.muli %arg1, %1 : i32
    %c0_i32 = arith.constant 0 : i32
    %c0_i32_0 = arith.constant 0 : i32
    return %arg0, %2, %c0_i32 : i32, i32, i32
  }
  func.func @transform_1(%arg0: i32, %arg1: i32, %arg2: memref<2xi32, #tpu.memory_space<smem>>, %arg3: memref<2xf32, #tpu.memory_space<smem>>) -> (i32, i32, i32) {
    %c0_i32 = arith.constant 0 : i32
    %c0_i32_0 = arith.constant 0 : i32
    return %arg0, %arg1, %c0_i32 : i32, i32, i32
  }
}

</mosaic_0001>

<bundles_post_ra>
// kernel: tpu_custom_call.1
= control target key start
LH: loop header
LB: loop body
LE: loop exit
PB: predicated region body
PF: predicated region fallthrough
CT: control target
= control target key end

     0   :  { %s705_s0 = inlined_call_operand.hbm [shape: s32[2], index: 0, kind: input, shape index: {}]   ;;  %s706_s2 = inlined_call_operand.hbm [shape: f32[2,8,128], index: 2, kind: input, shape index: {}]   ;;  %s707_s3 = inlined_call_operand.hbm [shape: f32[2,8,128], index: 3, kind: output, shape index: {}]   ;;  %s708_s1 = inlined_call_operand.vmem [shape: f32[2], index: 1, kind: input, shape index: {}]  }
   0x1   :  { %s358_s14 = scalar_lea.hbm %s705_s0, 16 }
   0x2   :  { %p359_p0 = scmp.ne.s32.totalorder %s705_s0, %s358_s14  ;;  %p362_p1 = scmp.lt.u32.totalorder %s358_s14, %s705_s0 }
   0x4   :  { %p364_p2 = pnand %p362_p1, %p359_p0 }
   0x6   :  { %367 = shalt.err (!%p364_p2)  }
   0x7   :  { %s496_s19 = smov [#allocation3]   ;;  %s10_s24 = sshll.u32 %s708_s1, 4  ;;  %s11_s24 = int_to_ptr.vmem [resolvable:$true] %s10_s24 }
   0x8   :  { %9 = dma.hbm_to_smem %s705_s0, 16, %s496_s19, [#allocation2] }
   0x9   :  { %s368_s25 = scalar_lea.vmem %s11_s24, 16  ;;  %p373_p4 = scmp.lt.s32.totalorder %s11_s24, %s11_s24 }
   0xa   :  { %p369_p3 = scmp.ne.s32.totalorder %s11_s24, %s368_s25  ;;  %p374_p5 = scmp.lt.s32.totalorder %s368_s25, %s368_s25 }
   0xc   :  { %p375_p6 = por %p374_p5, %p373_p4 }
   0xe   :  { %p376_p7 = pnand %p375_p6, %p369_p3 }
  0x10   :  { %379 = shalt.err (!%p376_p7)  }
  0x11   :  { %s497_s26 = smov [#allocation4]  }
  0x12   :  { %13 = dma.vmem_to_smem %s11_s24, 16, %s497_s26, [#allocation2] }
  0x13   :  { %462 = dma.done.wait [#allocation2], 32 }
  0x14   :  { %463 = vsyncadd [#allocation2], 4294967264 }
  0x15   :  { %15 = sfence }
  0x16   :  { %16 = vsyncpa [#allocation6], 0 }
  0x17   :  { %18 = vsyncpa [#allocation6 + $0x1], 0 }
  0x18   :  { %19 = vsyncpa [#allocation7], 0 }
  0x19   :  { %21 = vsyncpa [#allocation7 + $0x1], 0  ;;  %s536_s0 = smov 0   ;;  %s538_s1 = smov 0  }
  0x1a   :  { %s540_s27 = smov 0   ;;  %s542_s28 = smov 0  }
  0x1b   :  { %s544_s29 = smov 0   ;;  %s546_s30 = smov 0  }
  0x1c LB: > { %s278_s4 = sadd.s32 4294967295, %s494_s30   ;;  %s279_s5 = sadd.s32 4294967294, %s494_s30   ;;  %s494_s30 = sphi %s546_s30, %s27_s30   ;;  %s490_s29 = sphi %s544_s29, %s724_s29   ;;  %s486_s28 = sphi %s542_s28, %s723_s28   ;;  %s482_s27 = sphi %s540_s27, %s722_s27   ;;  %s478_s1 = sphi %s538_s1, %s721_s1   ;;  %s474_s0 = sphi %s536_s0, %s720_s0  }
  0x1d   : > { %s39_s6 = sadd.s32 1, %s490_s29  ;;  %s52_s7 = sadd.s32 1, %s482_s27 }
  0x1e   : > { %p41_p8 = scmp.ge.s32.totalorder %s39_s6, 2  ;;  %p59_p9 = scmp.ne.s32.totalorder %s482_s27, %s478_s1 }
  0x1f   : > { %p60_p10 = scmp.eq.s32.totalorder %s494_s30, 0  ;;  %p65_p11 = scmp.ne.s32.totalorder %s478_s1, %s474_s0 }
  0x20   : > { %s726_s6 = smov (%p41_p8, %s39_s6), 0  ;;  %p66_p13 = scmp.eq.s32.totalorder %s278_s4, 0 }
  0x21   : > { %p577_p12 = por %p60_p10, %p59_p9  ;;  %s47_s9 = ssub.s32 %s490_s29, %s726_s6 }
  0x22   : > { %p91_p0 = scmp.eq.s32.totalorder %s278_s4, 1  ;;  %p50_p1 = scmp.eq.s32.totalorder %s47_s9, 0 }
  0x23   : > { %p583_p2 = por %p66_p13, %p65_p11  ;;  %p97_p4 = scmp.eq.s32.totalorder %s279_s5, 1 }
  0x24   : > { %p587_p3 = por %p91_p0, %p59_p9  ;;  %p305_p7 = scmp.lt.s32.totalorder %s494_s30, 2 }
  0x25   : > { %s592_s12 = scalar_select %p50_p1, %s482_s27, %s52_s7  }
  0x26   : > { %s712_s11 = scalar_select %p587_p3, 1, 0 }
  0x27   : > { %p594_p5 = por %p97_p4, %p65_p11  ;;  %s117_s14 = sand.u32 1, %s482_s27  }
  0x28   : > { %s282_s15 = sshll.u32 %s117_s14, 3  ;;  %s283_s16 = sshll.u32 %s490_s29, 7 }
  0x29   : > { %s713_s13 = scalar_select %p594_p5, 1, 0 }
  0x2a   : > { %s605_s19 = scalar_lea.hbm %s706_s2, %s283_s16  ;;  %s121_s20 = scalar_lea.vmem [#allocation5], %s282_s15 }
  0x2b   : > { %s131_s21 = sshll.u32 %s121_s20, 4  ;;  %p611_p8 = pnand %p305_p7, %p577_p12  ;;  %s607_s21 = int_to_ptr.vmem [resolvable:$true] %s131_s21 }
  0x2c   : > { %s118_s23 = scalar_lea.sflag [#allocation6], %s117_s14  ;;  %s380_s24 = scalar_lea.hbm %s605_s19, 128 }
  0x2d   : > { %p381_p11 = scmp.ne.s32.totalorder %s605_s19, %s380_s24  ;;  %p382_p13 = pneg %p611_p8 }
  0x2e   : > { %s385_s4 = scalar_lea.hbm %s706_s2, 256  ;;  %p386_p12 = scmp.lt.u32.totalorder %s605_s19, %s706_s2 }
  0x2f   : > { %p383_p0 = pnand %p382_p13, %p381_p11  ;;  %p387_p4 = scmp.lt.u32.totalorder %s385_s4, %s380_s24 }
  0x30   : > { %p389_p6 = scmp.lt.u32.totalorder %s380_s24, %s605_s19 }
  0x31   : > { %p384_p1 = pneg %p383_p0  ;;  %p388_p7 = por %p387_p4, %p386_p12 }
  0x33   : > { %p390_p9 = por %p389_p6, %p388_p7 }
  0x35   : > { %p391_p10 = pnand %p390_p9, %p384_p1 }
  0x37   : > { %394 = shalt.err (!%p391_p10)
}
  0x38   : > { %s395_s8 = scalar_lea.vmem %s607_s21, 128  ;;  %s498_s9 = smov [#allocation5]  }
  0x39   : > { %p396_p11 = scmp.ne.s32.totalorder %s607_s21, %s395_s8  ;;  %s400_s14 = sshll.u32 %s498_s9, 4  ;;  %s401_s14 = int_to_ptr.vmem [resolvable:$false] %s400_s14 }
  0x3a   : > { %s402_s15 = scalar_lea.vmem %s401_s14, 256  ;;  %p403_p3 = scmp.lt.s32.totalorder %s607_s21, %s401_s14 }
  0x3b   : > { %p398_p0 = pnand %p396_p11, %p382_p13  ;;  %p404_p12 = scmp.lt.s32.totalorder %s402_s15, %s395_s8 }
  0x3d   : > { %p399_p5 = pneg %p398_p0  ;;  %p405_p4 = por %p404_p12, %p403_p3 }
  0x3f   : > { %p406_p6 = pnand %p405_p4, %p399_p5 }
  0x41   : > { %409 = shalt.err (!%p406_p6)
}
  0x42   : > { %300 = dma.hbm_to_vmem [thread:$0]  (!%p611_p8), %s605_s19, 128, %s607_s21, %s118_s23  }
  0x43   : > { %p715_p9 = scmp.lt.s32.totalorder %s494_s30, 3  ;;  %p716_p10 = scmp.ge.s32.totalorder %s494_s30, 1 }
  0x45   : > { %p137_p13 = pnand %p716_p10, %p715_p9 }
  0x46   : > { %s647_s16 = sand.u32 (!%p137_p13), 1, %s478_s1  }
  0x47   : > { %140 = sbr.rel (%p137_p13) target bundleno = 136 (0x88), region = 24  ;;  %s285_s17 = sshll.u32 (!%p137_p13), %s647_s16, 3 }
  0x48   : > { %s143_s18 = scalar_lea.sflag (!%p137_p13), [#allocation6], %s647_s16  ;;  %s146_s20 = scalar_lea.vmem (!%p137_p13), [#allocation5], %s285_s17 }
  0x4e   : > { %465 = dma.done.wait (%p583_p2), %s143_s18, 128  }
  0x4f   : > { %467 = vsyncadd (%p583_p2), %s143_s18, 4294967168  ;;  %s167_s19 = sld [smem:[#allocation3 + %s486_s28]]  ;;  %s164_s21 = scalar_lea.vmem [#allocation8], %s285_s17 }
  0x55   : > { %p287_p3 = scmp.ne.s32.totalorder %s167_s19, 0 }
  0x56   : > { %v499_v0 = vmov (!%p287_p3), 0.0  }
  0x57   : > { %171 = sbr.rel (%p287_p3) target bundleno = 94 (0x5e), region = 32  ;;  %172 = vst [vmem:[%s164_s21] sm:$0xff] (!%p287_p3), %v499_v0 }
  0x5e PF: > { %s173_s22 = sld [smem:[#allocation3 + %s486_s28]] }
  0x64   : > { %p288_p5 = scmp.eq.s32.totalorder %s173_s22, 0 }
  0x65   : > { %s179_s23 = sld [smem:[#allocation4 + %s486_s28]] (!%p288_p5)  ;;  %v178_v1 = vld [vmem:[%s146_s20] sm:$0xff] (!%p288_p5) }
  0x66   : > { %177 = sbr.rel (%p288_p5) target bundleno = 111 (0x6f), region = 36 }
  0x6b   : > { %v180_v2 = vstv (!%p288_p5), %s179_s23 }
  0x6c   : > { %v181_v3 = vmul.f32 (!%p288_p5), %v180_v2, %v178_v1 }
  0x6e   : > { %182 = vst [vmem:[%s164_s21] sm:$0xff] %v181_v3 }
  0x6f PF: > { %s290_s10 = sshll.u32 %s486_s28, 7  ;;  %s198_s4 = sshll.u32 %s164_s21, 4  ;;  %s199_s4 = int_to_ptr.vmem [resolvable:$true] %s198_s4 }
  0x70   : > { %s662_s26 = scalar_lea.hbm %s707_s3, %s290_s10  ;;  %s184_s5 = scalar_lea.sflag [#allocation7], %s647_s16 }
  0x71   : > { %s410_s7 = scalar_lea.vmem %s199_s4, 128  ;;  %p717_p8 = scmp.ne.s32.totalorder %s712_s11, 0 }
  0x72   : > { %p411_p2 = scmp.ne.s32.totalorder %s199_s4, %s410_s7  ;;  %s500_s8 = smov [#allocation8]  }
  0x73   : > { %s414_s9 = sshll.u32 %s500_s8, 4  ;;  %s415_s9 = int_to_ptr.vmem [resolvable:$false] %s414_s9 }
  0x74   : > { %p412_p1 = pnand %p411_p2, %p717_p8  ;;  %s416_s14 = scalar_lea.vmem %s415_s9, 256 }
  0x75   : > { %p417_p11 = scmp.lt.s32.totalorder %s199_s4, %s415_s9  ;;  %p418_p0 = scmp.lt.s32.totalorder %s416_s14, %s410_s7 }
  0x76   : > { %p413_p7 = pneg %p412_p1 }
  0x77   : > { %p419_p12 = por %p418_p0, %p417_p11 }
  0x79   : > { %p420_p4 = pnand %p419_p12, %p413_p7 }
  0x7b   : > { %423 = shalt.err (!%p420_p4)
}
  0x7c   : > { %s424_s28 = scalar_lea.hbm %s662_s26, 128  ;;  %s428_s17 = scalar_lea.hbm %s707_s3, 256 }
  0x7d   : > { %p425_p6 = scmp.ne.s32.totalorder %s662_s26, %s424_s28  ;;  %p429_p13 = scmp.lt.u32.totalorder %s662_s26, %s707_s3 }
  0x7e   : > { %p430_p3 = scmp.lt.u32.totalorder %s428_s17, %s424_s28  ;;  %p432_p2 = scmp.lt.u32.totalorder %s424_s28, %s662_s26 }
  0x7f   : > { %p426_p9 = pnand %p425_p6, %p717_p8 }
  0x80   : > { %p431_p5 = por %p430_p3, %p429_p13 }
  0x81   : > { %p427_p10 = pneg %p426_p9 }
  0x82   : > { %p433_p1 = por %p432_p2, %p431_p5 }
  0x84   : > { %p434_p7 = pnand %p433_p1, %p427_p10 }
  0x86   : > { %437 = shalt.err (!%p434_p7)
}
  0x87   : > { %295 = dma.vmem_to_hbm [thread:$0]  (%p717_p8), %s199_s4, 128, %s662_s26, %s184_s5  }
  0x88 PF: > { %s210_s19 = sand.u32 1, %s474_s0   ;;  %p718_p11 = scmp.ne.s32.totalorder %s713_s13, 0 }
  0x89   : > { %p719_p0 = scmp.ge.s32.totalorder %s494_s30, 2  ;;  %s211_s21 = scalar_lea.sflag [#allocation7], %s210_s19 }
  0x8b   : > { %p302_p12 = pnand %p719_p0, %p718_p11 }
  0x8d   : > { %469 = dma.done.wait (!%p302_p12), %s211_s21, 128  }
  0x8e   : > { %471 = vsyncadd (!%p302_p12), %s211_s21, 4294967168  ;;  %s27_s30 = sadd.s32 1, %s494_s30   ;;  %s720_s0 = smov %s478_s1 }
  0x8f   : > { %p24_p4 = scmp.ge.s32.totalorder %s27_s30, 4   ;;  %s721_s1 = smov %s482_s27 }
  0x90   : > { %s722_s27 = smov %s592_s12  ;;  %s723_s28 = smov %s490_s29 }
  0x91   : > { %s724_s29 = smov %s726_s6  ;;  %26 = sbr.rel (!%p24_p4) target bundleno = 28 (0x1c), region = 77 }
  0x98   :  { %216 = vsyncpa [#allocation6], 1 }
  0x99   :  { %218 = vsyncpa [#allocation6 + $0x1], 1 }
  0x9a   :  { %219 = vsyncpa [#allocation7], 1 }
  0x9b   :  { %221 = vsyncpa [#allocation7 + $0x1], 1 }

</bundles_post_ra>
